<compile_context>
chip_gen: v5e
topology: v5e:2x2
jax: 0.10.0
libtpu: 0.0.40
codegen_flags: <defaults>
</compile_context>

<pallas_src>
import functools

import jax
import jax.numpy as jnp
from jax import lax
from jax.experimental import pallas as pl
from jax.experimental.pallas import tpu as pltpu

_TARGET_TILE_BYTES = 8 * 1024 * 1024  # per-input tile; 2 inputs x 2 bufs ~= 32 MiB


def _neg_cos_sim_kernel(x0_ref, x1_ref, cos_ref, dot_ref, n0_ref, n1_ref, *, eps):
    """Grid = (batch tiles, feature tiles); feature axis carries accumulators."""
    k = pl.program_id(1)

    @pl.when(k == 0)
    def _():
        dot_ref[...] = jnp.zeros_like(dot_ref)
        n0_ref[...] = jnp.zeros_like(n0_ref)
        n1_ref[...] = jnp.zeros_like(n1_ref)

    x0 = x0_ref[...].astype(jnp.float32)
    x1 = x1_ref[...].astype(jnp.float32)

    # Per-row partial reductions over this feature tile (lane-axis reduce, XLU).
    dot_ref[...] += jnp.sum(x0 * x1, axis=-1, keepdims=True)
    n0_ref[...] += jnp.sum(x0 * x0, axis=-1, keepdims=True)
    n1_ref[...] += jnp.sum(x1 * x1, axis=-1, keepdims=True)

    @pl.when(k == pl.num_programs(1) - 1)
    def _():
        # PyTorch clamps the product of the norms: denom = max(|x0|*|x1|, eps).
        denom_sq = jnp.maximum(n0_ref[...] * n1_ref[...], jnp.float32(eps * eps))
        cos_ref[...] = dot_ref[...] * lax.rsqrt(denom_sq)  # (block_b, 1) per-row cos


def _largest_aligned_divisor(n, align, cap):
    """Largest d <= cap with d % align == 0 and n % d == 0 (None if none exists)."""
    cap = min(cap, n)
    d = cap - (cap % align)
    while d >= align:
        if n % d == 0:
            return d
        d -= align
    return None


def _pick_tiles(B, D, itemsize):
    # Feature tile: keep full D unless even an 8-row slab of full D overshoots
    # the per-tile budget; then split D on 128-lane-aligned divisors.
    if 8 * D * itemsize <= _TARGET_TILE_BYTES:
        block_d = D
    else:
        block_d = _largest_aligned_divisor(
            D, 128, max(128, _TARGET_TILE_BYTES // (8 * itemsize))) or D

    # Batch tile: as many rows as fit the budget, multiple of 8 (f32 sublane),
    # and a divisor of B so no masking is needed.  Fall back to full B.
    if B % 8 != 0 or B <= 8:
        block_b = B
    else:
        cap = max(8, _TARGET_TILE_BYTES // (block_d * itemsize))
        block_b = _largest_aligned_divisor(B, 8, cap) or B
    return block_b, block_d


def negative_cosine_similarity(x0, x1, *, eps=1e-8, block_b=None, block_d=None):
    """-mean(cosine_similarity(x0, x1, dim=1, eps)) via a Pallas TPU kernel."""
    assert x0.shape == x1.shape and x0.ndim == 2, "expected matching (B, D) inputs"
    B, D = x0.shape
    itemsize = max(jnp.dtype(x0.dtype).itemsize, jnp.dtype(x1.dtype).itemsize)

    auto_b, auto_d = _pick_tiles(B, D, itemsize)
    block_b = auto_b if block_b is None else block_b
    block_d = auto_d if block_d is None else block_d
    if B % block_b != 0 or D % block_d != 0:
        raise ValueError(f"block sizes ({block_b}, {block_d}) must divide ({B}, {D})")

    n_b = B // block_b
    n_d = D // block_d

    # Double-buffered footprint: 2 inputs x 2 buffers x tile, plus lane-padded
    # (block_b, 128) f32 accumulators/output.  Cap at 48 MiB (v7x: 64 MiB/TC).
    tile_bytes = block_b * block_d * itemsize
    scratch_bytes = 4 * block_b * 128 * 4
    footprint = 4 * tile_bytes + scratch_bytes
    vmem_limit = int(min(48 << 20, max(32 << 20, footprint + (4 << 20))))

    kernel = functools.partial(_neg_cos_sim_kernel, eps=float(eps))

    cos = pl.pallas_call(
        kernel,
        out_shape=jax.ShapeDtypeStruct((B, 1), jnp.float32),
        grid_spec=pltpu.PrefetchScalarGridSpec(
            num_scalar_prefetch=0,
            grid=(n_b, n_d),
            in_specs=[
                pl.BlockSpec((block_b, block_d), lambda i, k: (i, k)),
                pl.BlockSpec((block_b, block_d), lambda i, k: (i, k)),
            ],
            out_specs=pl.BlockSpec((block_b, 1), lambda i, k: (i, 0)),
            scratch_shapes=[
                pltpu.VMEM((block_b, 1), jnp.float32),  # sum(x0*x1)
                pltpu.VMEM((block_b, 1), jnp.float32),  # sum(x0*x0)
                pltpu.VMEM((block_b, 1), jnp.float32),  # sum(x1*x1)
            ],
        ),
        compiler_params=pltpu.CompilerParams(
            dimension_semantics=("parallel", "arbitrary"),
            vmem_limit_bytes=vmem_limit,
        ),
    )(x0, x1)

    # Final reduction over B per-row cosines (tiny, wrapper side).
    return -jnp.mean(cos)


def _reference(a, b, eps=1e-8):
    a = a.astype(jnp.float32)
    b = b.astype(jnp.float32)
    dot = jnp.sum(a * b, axis=1)
    denom_sq = jnp.maximum(jnp.sum(a * a, axis=1) * jnp.sum(b * b, axis=1), eps * eps)
    return -jnp.mean(dot * lax.rsqrt(denom_sq))


if __name__ == "__main__":
    key = jax.random.PRNGKey(0)

    # Case 1: shapes from the module's docstring example (batch=10, dim=128).
    k0, k1 = jax.random.split(key)
    B, D = 10, 128
    x0 = jax.random.normal(k0, (B, D), dtype=jnp.float32)
    x1 = jax.random.normal(k1, (B, D), dtype=jnp.float32)
    loss = negative_cosine_similarity(x0, x1)
    jax.block_until_ready(loss)
    expected = _reference(x0, x1)
    assert jnp.allclose(loss, expected, atol=1e-5, rtol=1e-5), (loss, expected)

    # Case 2: force a multi-tile (batch x feature) grid to exercise the
    # accumulator / per-tile path, with bf16 inputs (upcast inside the kernel).
    k2, k3 = jax.random.split(k1)
    B2, D2 = 32, 256
    y0 = jax.random.normal(k2, (B2, D2), dtype=jnp.bfloat16)
    y1 = jax.random.normal(k3, (B2, D2), dtype=jnp.bfloat16)
    loss2 = negative_cosine_similarity(y0, y1, block_b=8, block_d=128)
    jax.block_until_ready(loss2)
    expected2 = _reference(y0, y1)
    assert jnp.allclose(loss2, expected2, atol=2e-3, rtol=2e-3), (loss2, expected2)

    print("KERNEL_OK")
</pallas_src>

<mosaic_0001>
module attributes {stable_mosaic.version = 11 : i64} {
  func.func @_neg_cos_sim_kernel(%arg0: i32, %arg1: i32, %arg2: memref<10x128xf32, #tpu.memory_space<vmem>>, %arg3: memref<10x128xf32, #tpu.memory_space<vmem>>, %arg4: memref<10x1xf32, #tpu.memory_space<vmem>>, %arg5: memref<10x1xf32, #tpu.memory_space<vmem>>, %arg6: memref<10x1xf32, #tpu.memory_space<vmem>>, %arg7: memref<10x1xf32, #tpu.memory_space<vmem>>) attributes {dimension_semantics = [#tpu.dimension_semantics<parallel>, #tpu.dimension_semantics<arbitrary>], iteration_bounds = array<i64: 1, 1>, scalar_prefetch = 0 : i64, scratch_operands = 3 : i64, tpu.core_type = #tpu.core_type<tc>, window_params = [{transform_indices = @transform_0, window_bounds = array<i64: 10, 128>}, {transform_indices = @transform_1, window_bounds = array<i64: 10, 128>}, {transform_indices = @transform_2, window_bounds = array<i64: 10, 1>}]} {
    %c0_i32 = arith.constant 0 : i32
    %0 = arith.cmpi eq, %arg1, %c0_i32 : i32
    %1 = arith.extui %0 : i1 to i32
    %c0_i32_0 = arith.constant 0 : i32
    %2 = arith.cmpi ne, %1, %c0_i32_0 : i32
    scf.if %2 {
      %cst_20 = arith.constant 0.000000e+00 : f32
      %26 = vector.broadcast %cst_20 : f32 to vector<10x1xf32>
      %c0_21 = arith.constant 0 : index
      %c0_22 = arith.constant 0 : index
      %27 = vector.load %arg5[%c0_21, %c0_22] : memref<10x1xf32, #tpu.memory_space<vmem>>, vector<10x1xf32>
      tpu.vector_store %arg5[%c0_21, %c0_22], %26 {strides = array<i32>} : memref<10x1xf32, #tpu.memory_space<vmem>>, vector<10x1xf32>,
      %cst_23 = arith.constant 0.000000e+00 : f32
      %28 = vector.broadcast %cst_23 : f32 to vector<10x1xf32>
      %c0_24 = arith.constant 0 : index
      %c0_25 = arith.constant 0 : index
      %29 = vector.load %arg6[%c0_24, %c0_25] : memref<10x1xf32, #tpu.memory_space<vmem>>, vector<10x1xf32>
      tpu.vector_store %arg6[%c0_24, %c0_25], %28 {strides = array<i32>} : memref<10x1xf32, #tpu.memory_space<vmem>>, vector<10x1xf32>,
      %cst_26 = arith.constant 0.000000e+00 : f32
      %30 = vector.broadcast %cst_26 : f32 to vector<10x1xf32>
      %c0_27 = arith.constant 0 : index
      %c0_28 = arith.constant 0 : index
      %31 = vector.load %arg7[%c0_27, %c0_28] : memref<10x1xf32, #tpu.memory_space<vmem>>, vector<10x1xf32>
      tpu.vector_store %arg7[%c0_27, %c0_28], %30 {strides = array<i32>} : memref<10x1xf32, #tpu.memory_space<vmem>>, vector<10x1xf32>,
    } else {
    }
    %c0 = arith.constant 0 : index
    %c0_1 = arith.constant 0 : index
    %3 = vector.load %arg2[%c0, %c0_1] : memref<10x128xf32, #tpu.memory_space<vmem>>, vector<10x128xf32>
    %c0_2 = arith.constant 0 : index
    %c0_3 = arith.constant 0 : index
    %4 = vector.load %arg3[%c0_2, %c0_3] : memref<10x128xf32, #tpu.memory_space<vmem>>, vector<10x128xf32>
    %c0_4 = arith.constant 0 : index
    %c0_5 = arith.constant 0 : index
    %5 = vector.load %arg5[%c0_4, %c0_5] : memref<10x1xf32, #tpu.memory_space<vmem>>, vector<10x1xf32>
    %6 = arith.mulf %3, %4 : vector<10x128xf32>
    %cst = arith.constant dense<0.000000e+00> : vector<10xf32>
    %7 = vector.multi_reduction <add>, %6, %cst [1] : vector<10x128xf32> to vector<10xf32>
    %8 = vector.shape_cast %7 : vector<10xf32> to vector<10x1xf32>
    %9 = arith.addf %5, %8 : vector<10x1xf32>
    %c0_6 = arith.constant 0 : index
    %c0_7 = arith.constant 0 : index
    %10 = vector.load %arg5[%c0_6, %c0_7] : memref<10x1xf32, #tpu.memory_space<vmem>>, vector<10x1xf32>
    tpu.vector_store %arg5[%c0_6, %c0_7], %9 {strides = array<i32>} : memref<10x1xf32, #tpu.memory_space<vmem>>, vector<10x1xf32>,
    %c0_8 = arith.constant 0 : index
    %c0_9 = arith.constant 0 : index
    %11 = vector.load %arg6[%c0_8, %c0_9] : memref<10x1xf32, #tpu.memory_space<vmem>>, vector<10x1xf32>
    %12 = arith.mulf %3, %3 : vector<10x128xf32>
    %cst_10 = arith.constant dense<0.000000e+00> : vector<10xf32>
    %13 = vector.multi_reduction <add>, %12, %cst_10 [1] : vector<10x128xf32> to vector<10xf32>
    %14 = vector.shape_cast %13 : vector<10xf32> to vector<10x1xf32>
    %15 = arith.addf %11, %14 : vector<10x1xf32>
    %c0_11 = arith.constant 0 : index
    %c0_12 = arith.constant 0 : index
    %16 = vector.load %arg6[%c0_11, %c0_12] : memref<10x1xf32, #tpu.memory_space<vmem>>, vector<10x1xf32>
    tpu.vector_store %arg6[%c0_11, %c0_12], %15 {strides = array<i32>} : memref<10x1xf32, #tpu.memory_space<vmem>>, vector<10x1xf32>,
    %c0_13 = arith.constant 0 : index
    %c0_14 = arith.constant 0 : index
    %17 = vector.load %arg7[%c0_13, %c0_14] : memref<10x1xf32, #tpu.memory_space<vmem>>, vector<10x1xf32>
    %18 = arith.mulf %4, %4 : vector<10x128xf32>
    %cst_15 = arith.constant dense<0.000000e+00> : vector<10xf32>
    %19 = vector.multi_reduction <add>, %18, %cst_15 [1] : vector<10x128xf32> to vector<10xf32>
    %20 = vector.shape_cast %19 : vector<10xf32> to vector<10x1xf32>
    %21 = arith.addf %17, %20 : vector<10x1xf32>
    %c0_16 = arith.constant 0 : index
    %c0_17 = arith.constant 0 : index
    %22 = vector.load %arg7[%c0_16, %c0_17] : memref<10x1xf32, #tpu.memory_space<vmem>>, vector<10x1xf32>
    tpu.vector_store %arg7[%c0_16, %c0_17], %21 {strides = array<i32>} : memref<10x1xf32, #tpu.memory_space<vmem>>, vector<10x1xf32>,
    %c0_i32_18 = arith.constant 0 : i32
    %23 = arith.cmpi eq, %arg1, %c0_i32_18 : i32
    %24 = arith.extui %23 : i1 to i32
    %c0_i32_19 = arith.constant 0 : i32
    %25 = arith.cmpi ne, %24, %c0_i32_19 : i32
    scf.if %25 {
      %c0_20 = arith.constant 0 : index
      %c0_21 = arith.constant 0 : index
      %26 = vector.load %arg6[%c0_20, %c0_21] : memref<10x1xf32, #tpu.memory_space<vmem>>, vector<10x1xf32>
      %c0_22 = arith.constant 0 : index
      %c0_23 = arith.constant 0 : index
      %27 = vector.load %arg7[%c0_22, %c0_23] : memref<10x1xf32, #tpu.memory_space<vmem>>, vector<10x1xf32>
      %28 = arith.mulf %26, %27 : vector<10x1xf32>
      %cst_24 = arith.constant 1.000000e-16 : f32
      %29 = vector.broadcast %cst_24 : f32 to vector<10x1xf32>
      %30 = arith.maximumf %28, %29 : vector<10x1xf32>
      %c0_25 = arith.constant 0 : index
      %c0_26 = arith.constant 0 : index
      %31 = vector.load %arg5[%c0_25, %c0_26] : memref<10x1xf32, #tpu.memory_space<vmem>>, vector<10x1xf32>
      %32 = math.rsqrt %30 : vector<10x1xf32>
      %33 = arith.mulf %31, %32 : vector<10x1xf32>
      %c0_27 = arith.constant 0 : index
      %c0_28 = arith.constant 0 : index
      %34 = vector.load %arg4[%c0_27, %c0_28] : memref<10x1xf32, #tpu.memory_space<vmem>>, vector<10x1xf32>
      tpu.vector_store %arg4[%c0_27, %c0_28], %33 {strides = array<i32>} : memref<10x1xf32, #tpu.memory_space<vmem>>, vector<10x1xf32>,
    } else {
    }
    return
  }
  func.func @transform_0(%arg0: i32, %arg1: i32) -> (i32, i32) {
    %c0_i32 = arith.constant 0 : i32
    return %arg0, %arg1 : i32, i32
  }
  func.func @transform_1(%arg0: i32, %arg1: i32) -> (i32, i32) {
    %c0_i32 = arith.constant 0 : i32
    return %arg0, %arg1 : i32, i32
  }
  func.func @transform_2(%arg0: i32, %arg1: i32) -> (i32, i32) {
    %c0_i32 = arith.constant 0 : i32
    %c0_i32_0 = arith.constant 0 : i32
    return %arg0, %c0_i32 : i32, i32
  }
}

</mosaic_0001>

<bundles_post_ra>
// kernel: tpu_custom_call.1
= control target key start
LH: loop header
LB: loop body
LE: loop exit
PB: predicated region body
PF: predicated region fallthrough
CT: control target
= control target key end

     0   :  { %7 = vsyncpa [#allocation6], 0  ;;  %s251_s0 = inlined_call_operand.hbm [shape: f32[10,128], index: 0, kind: input, shape index: {}]   ;;  %s252_s1 = inlined_call_operand.hbm [shape: f32[10,128], index: 1, kind: input, shape index: {}]   ;;  %s253_s2 = inlined_call_operand.vmem [shape: f32[10,1], index: 2, kind: output, shape index: {}]  }
   0x1   :  { %s13_s11 = sshll.u32 %s251_s0, 4  ;;  %s14_s11 = int_to_ptr.hbm [resolvable:$true] %s13_s11 }
   0x2   :  { %8 = vsyncpa [#allocation8], 0  ;;  %s205_s12 = smov [#allocation5]   ;;  %s26_s16 = sshll.u32 %s252_s1, 4  ;;  %s27_s16 = int_to_ptr.hbm [resolvable:$true] %s26_s16 }
   0x3   :  { %s15_s13 = sshll.u32 %s205_s12, 4  ;;  %s206_s17 = smov 128   ;;  %s16_s13 = int_to_ptr.vmem [resolvable:$true] %s15_s13 }
   0x4   :  { %s207_s18 = smov 8   ;;  %s208_s19 = smov [#allocation7]  }
   0x5   :  { %21 = dma.hbm_to_vmem [thread:$0]  %s14_s11, 256, %s16_s13, [#allocation6], %s206_s17, %s206_s17, %s207_s18  }
   0x6   :  { %s28_s20 = sshll.u32 %s208_s19, 4  ;;  %s29_s20 = int_to_ptr.vmem [resolvable:$true] %s28_s20 }
   0x7   :  { %34 = dma.hbm_to_vmem [thread:$0]  %s27_s16, 256, %s29_s20, [#allocation8], %s206_s17, %s206_s17, %s207_s18  }
   0x8   :  { %201 = dma.done.wait [#allocation6], 256  }
   0x9   :  { %202 = vsyncadd [#allocation6], 4294967040 }
   0xa   :  { %203 = dma.done.wait [#allocation8], 256  }
   0xb   :  { %204 = vsyncadd [#allocation8], 4294967040  ;;  %vm47_vm0 = vcmask 7168   ;;  %v209_v0 = vmov 0.0   ;;  %v57_v1 = vld [vmem:[#allocation7] sm:$0xff]  ;;  %v55_v2 = vld [vmem:[#allocation5] sm:$0xff] }
   0xc   :  { %53 = vst.msk [vmem:[#allocation4] sm:$0xff] %vm47_vm0, %v209_v0  ;;  %v90_v3 = vmul.f32 %v57_v1, %v57_v1  ;;  %v77_v4 = vmul.f32 %v55_v2, %v55_v2  ;;  %v58_v5 = vld [vmem:[#allocation7 + $0x8] sm:$0x3]  ;;  %v56_v6 = vld [vmem:[#allocation5 + $0x8] sm:$0x3]  ;;  %v61_v7 = vmul.f32 %v57_v1, %v55_v2  ;;  %vm65_vm1 = vcmask 1041408  }
   0xd   :  { %48 = vst.msk [vmem:[#allocation2] sm:$0xff] %vm47_vm0, %v209_v0  ;;  %v91_v8 = vmul.f32 %v58_v5, %v58_v5  ;;  %v78_v9 = vmul.f32 %v56_v6, %v56_v6  ;;  %v62_v10 = vmul.f32 %v58_v5, %v56_v6  ;;  %vm49_vm2 = vcmask 1024  }
   0xe   :  { %51 = vst.msk [vmem:[#allocation3] sm:$0xff] %vm47_vm0, %v209_v0  ;;  %92 = vadd.xlane.f32.xlu1 %v90_v3  ;;  %79 = vadd.xlane.f32.xlu0 %v77_v4 }
   0xf   :  { %63 = vadd.xlane.f32.xlu2 %v61_v7  ;;  %v94_v11 = vsel %vm65_vm1, %v91_v8, 0.0  ;;  %v81_v12 = vsel %vm65_vm1, %v78_v9, 0.0  ;;  %v66_v13 = vsel %vm65_vm1, %v62_v10, 0.0  ;;  %54 = vst.msk [vmem:[#allocation4 + $0x8] sm:$0x3] %vm49_vm2, %v209_v0 }
  0x10   :  { %50 = vst.msk [vmem:[#allocation2 + $0x8] sm:$0x3] %vm49_vm2, %v209_v0 }
  0x11   :  { %52 = vst.msk [vmem:[#allocation3 + $0x8] sm:$0x3] %vm49_vm2, %v209_v0 }
  0x13   :  { %v88_v14 = vld [vmem:[#allocation4] sm:$0xff] }
  0x14   :  { %v59_v16 = vld [vmem:[#allocation2] sm:$0xff] }
  0x15   :  { %v75_v15 = vld [vmem:[#allocation3] sm:$0xff] }
  0x16   :  { %95 = vadd.xlane.f32.xlu1 %v94_v11  ;;  %82 = vadd.xlane.f32.xlu0 %v81_v12  ;;  %v89_v23 = vld [vmem:[#allocation4 + $0x8] sm:$0x3] }
  0x17   :  { %67 = vadd.xlane.f32.xlu2 %v66_v13  ;;  %v60_v25 = vld [vmem:[#allocation2 + $0x8] sm:$0x3] }
  0x18   :  { %v76_v24 = vld [vmem:[#allocation3 + $0x8] sm:$0x3] }
  0x81   :  { %v93_v17 = vpop.xlane.xlu1 %92  ;;  %v80_v18 = vpop.xlane.xlu0 %79 }
  0x82   :  { %v97_v19 = vadd.f32 %v93_v17, %v88_v14  ;;  %v84_v20 = vadd.f32 %v80_v18, %v75_v15  ;;  %v64_v21 = vpop.xlane.xlu2 %63 }
  0x83   :  { %v69_v22 = vadd.f32 %v64_v21, %v59_v16 }
  0x84   :  { %99 = vst.msk [vmem:[#allocation4] sm:$0xff] %vm47_vm0, %v97_v19 }
  0x85   :  { %86 = vst.msk [vmem:[#allocation3] sm:$0xff] %vm47_vm0, %v84_v20 }
  0x86   :  { %72 = vst.msk [vmem:[#allocation2] sm:$0xff] %vm47_vm0, %v69_v22 }
  0x89   :  { %v96_v26 = vpop.xlane.xlu1 %95  ;;  %v83_v27 = vpop.xlane.xlu0 %82 }
  0x8a   :  { %v98_v28 = vadd.f32 %v96_v26, %v89_v23  ;;  %v85_v29 = vadd.f32 %v83_v27, %v76_v24  ;;  %v68_v30 = vpop.xlane.xlu2 %67 }
  0x8b   :  { %v106_v31 = vld [vmem:[#allocation4] sm:$0xff]  ;;  %v70_v32 = vadd.f32 %v68_v30, %v60_v25 }
  0x8c   :  { %v104_v33 = vld [vmem:[#allocation3] sm:$0xff]  ;;  %100 = vst.msk [vmem:[#allocation4 + $0x8] sm:$0x3] %vm49_vm2, %v98_v28 }
  0x8d   :  { %v108_v34 = vmul.f32 %v106_v31, %v104_v33  ;;  %87 = vst.msk [vmem:[#allocation3 + $0x8] sm:$0x3] %vm49_vm2, %v85_v29  ;;  %v112_v47 = vld [vmem:[#allocation2] sm:$0xff] }
  0x8e   :  { %74 = vst.msk [vmem:[#allocation2 + $0x8] sm:$0x3] %vm49_vm2, %v70_v32 }
  0x8f   :  { %v110_v35 = vmax.f32 %v108_v34, 1e-16 }
  0x91   :  { %149 = vrsqrt.f32 %v110_v35  ;;  %vm120_vm4 = vweird.f32 %v110_v35 }
  0x93   :  { %v107_v36 = vld [vmem:[#allocation4 + $0x8] sm:$0x3] }
  0x94   :  { %v105_v37 = vld [vmem:[#allocation3 + $0x8] sm:$0x3] }
  0x95   :  { %v109_v38 = vmul.f32 %v107_v36, %v105_v37  ;;  %v113_v54 = vld [vmem:[#allocation2 + $0x8] sm:$0x3] }
  0x97   :  { %v150_v39 = vpop.eup %149  ;;  %v111_v40 = vmax.f32 %v109_v38, 1e-16 }
  0x98   :  { %v115_v41 = vmul.f32 %v150_v39, %v110_v35  ;;  %vm121_vm3 = vweird.f32 %v150_v39 }
  0x99   :  { %151 = vrsqrt.f32 %v111_v40  ;;  %vm122_vm5 = vmor %vm120_vm4, %vm121_vm3  ;;  %vm130_vm7 = vweird.f32 %v111_v40 }
  0x9a   :  { %v116_v42 = vmul.f32 %v150_v39, %v115_v41 }
  0x9c   :  { %v117_v43 = vmul.f32 0.5, %v116_v42 }
  0x9e   :  { %v118_v44 = vsub.f32 1.5, %v117_v43 }
  0x9f   :  { %v152_v45 = vpop.eup %151 }
  0xa0   :  { %v125_v46 = vmul.f32 %v152_v45, %v111_v40  ;;  %v119_v48 = vmul.f32 %v150_v39, %v118_v44  ;;  %vm131_vm6 = vweird.f32 %v152_v45 }
  0xa1   :  { %vm132_vm8 = vmor %vm130_vm7, %vm131_vm6 }
  0xa2   :  { %v126_v49 = vmul.f32 %v152_v45, %v125_v46  ;;  %v123_v50 = vsel %vm122_vm5, %v150_v39, %v119_v48 }
  0xa3   :  { %v134_v51 = vmul.f32 %v123_v50, %v112_v47 }
  0xa4   :  { %v127_v52 = vmul.f32 0.5, %v126_v49 }
  0xa5   :  { %136 = vst.msk [vmem:[%s253_s2] sm:$0xff] %vm47_vm0, %v134_v51 }
  0xa6   :  { %v128_v53 = vsub.f32 1.5, %v127_v52 }
  0xa8   :  { %v129_v55 = vmul.f32 %v152_v45, %v128_v53 }
  0xaa   :  { %v133_v56 = vsel %vm132_vm8, %v152_v45, %v129_v55 }
  0xab   :  { %v135_v57 = vmul.f32 %v133_v56, %v113_v54 }
  0xad   :  { %137 = vst.msk [vmem:[%s253_s2 + $0x8] sm:$0x3] %vm49_vm2, %v135_v57 }
  0xae   :  { %142 = vsyncpa [#allocation6], 1 }
  0xaf   :  { %143 = vsyncpa [#allocation8], 1 }

</bundles_post_ra>
